<compile_context>
chip_gen: v5e
topology: v5e:2x2
jax: 0.10.0
libtpu: 0.0.40
codegen_flags: <defaults>
</compile_context>

<pallas_src>
import numpy as np
import jax
import jax.numpy as jnp
from jax import lax
from jax.experimental import pallas as pl
from jax.experimental.pallas import tpu as pltpu


def _upsample1d_kernel(x_ref, w_ref, b_ref, lh_ref, rh_ref, pe_ref, po_ref, out_ref):
    # x_ref:   (1, C, TL)      input tile t of batch row n
    # w_ref:   (4*rp, C)       stacked per-tap weights (tap k at rows [k*rp, k*rp+C))
    # b_ref:   (C, 1)          bias
    # lh_ref:  (1, 1, C, 1)    left halo:  W3^T x[:, t*TL - 1]   (zeros for t == 0)
    # rh_ref:  (1, 1, C, 1)    right halo: W0^T x[:, (t+1)*TL]   (zeros for t == T-1)
    # pe_ref:  (CH, 2*CH)      0/1 permutation, even lanes
    # po_ref:  (CH, 2*CH)      0/1 permutation, odd lanes
    # out_ref: (1, C, 2*TL)    output tile t of batch row n
    C = b_ref.shape[0]
    TL = x_ref.shape[2]
    rp = w_ref.shape[0] // 4
    CH = pe_ref.shape[0]
    f32 = jnp.float32
    hi = lax.Precision.HIGHEST

    # One stacked MXU matmul produces all four tap results for this tile.
    x = x_ref[0]                                                     # (C, TL)
    c = jnp.dot(w_ref[...], x, preferred_element_type=f32, precision=hi)  # (4rp, TL)
    c0 = c[0 * rp:0 * rp + C]
    c1 = c[1 * rp:1 * rp + C]
    c2 = c[2 * rp:2 * rp + C]
    c3 = c[3 * rp:3 * rp + C]

    b = b_ref[...]                                                   # (C, 1)
    lh = lh_ref[0, 0]                                                # (C, 1)
    rh = rh_ref[0, 0]                                                # (C, 1)

    # y[2j]   = c1[j] + c3[j-1] + b   (halo column supplies c3[-1])
    # y[2j+1] = c2[j] + c0[j+1] + b   (halo column supplies c0[TL])
    # TODO(synk): the +/-1 lane shifts could use pltpu.roll + a boundary fixup
    # to route through the XLU instead of lane-concatenates.
    e = c1 + jnp.concatenate([lh, c3[:, :TL - 1]], axis=1) + b       # (C, TL)
    o = c2 + jnp.concatenate([c0[:, 1:TL], rh], axis=1) + b          # (C, TL)

    # Even/odd lane interleave on the MXU: two 0/1 permutation matmuls per
    # 128-lane chunk -> dense, lane-aligned 2*CH-wide stores.
    pe = pe_ref[...]
    po = po_ref[...]
    for k in range(TL // CH):
        ek = e[:, k * CH:(k + 1) * CH]
        ok = o[:, k * CH:(k + 1) * CH]
        y = (jnp.dot(ek, pe, preferred_element_type=f32, precision=hi) +
             jnp.dot(ok, po, preferred_element_type=f32, precision=hi))
        out_ref[0, :, 2 * k * CH:2 * (k + 1) * CH] = y.astype(out_ref.dtype)


def _round_up(v, m):
    return ((v + m - 1) // m) * m


def _vmem_capacity_bytes():
    try:
        return int(pltpu.get_tpu_info().vmem_capacity_bytes)
    except Exception:
        return 64 * 1024 * 1024      # conservative (v7x-sized) fallback


def _vmem_estimate_bytes(C, rp, tl, ch, cb):
    db = 2                                   # Pallas double-buffers each operand
    x_blk = db * C * tl * cb                 # input tile
    o_blk = db * C * 2 * tl * 4              # output tile
    w_blk = db * 4 * rp * C * cb             # stacked tap weights
    p_blk = db * 2 * (ch * 2 * ch * 4)       # P_even + P_odd
    tmps = 4 * rp * tl * 4 + 4 * C * tl * 4  # c / e / o temporaries
    small = db * 8 * C * 4 * 4               # bias + halo columns (padded)
    return x_blk + o_blk + w_blk + p_blk + tmps + small


def _choose_tiling(C, L, cb):
    """Returns (L_pad, tile_l, CH)."""
    rp = _round_up(max(C, 1), 8)
    if L % 128 != 0 and L <= 256:
        return L, L, L                       # tiny / irregular length: one full-L tile
    L_pad = _round_up(L, 128)
    budget = int(_vmem_capacity_bytes() * 0.55)
    tile = 128
    for cand in (2048, 1024, 512, 256, 128):
        if L_pad % cand == 0 and _vmem_estimate_bytes(C, rp, cand, 128, cb) <= budget:
            tile = cand
            break
    return L_pad, tile, 128


def upsample1d(x, weight, bias, *, tile_l=None, compute_dtype=jnp.float32):
    """x: (N, C, L); weight: (C_in, C_out, 4) (PyTorch ConvTranspose1d layout);
    bias: (C_out,).  Returns (N, C, 2L) float32.

    compute_dtype=jnp.bfloat16 enables the bf16 MXU / halved-HBM path; the
    float32 default matches the PyTorch module's numerics."""
    N, C, L = x.shape
    assert weight.shape == (C, C, 4), weight.shape
    assert bias.shape == (C,), bias.shape

    cb = jnp.dtype(compute_dtype).itemsize
    rp = _round_up(C, 8)
    L_pad, auto_tl, auto_ch = _choose_tiling(C, L, cb)
    if tile_l is None:
        tile_l, CH = auto_tl, auto_ch
    else:
        assert L_pad % tile_l == 0, (L_pad, tile_l)
        CH = 128 if tile_l % 128 == 0 else tile_l
    T = L_pad // tile_l

    xf = x.astype(jnp.float32)
    if L_pad != L:
        xf = jnp.pad(xf, ((0, 0), (0, 0), (0, L_pad - L)))

    # (C_in, C_out, K) -> (K, C_out, C_in); pad C_out rows to a sublane multiple
    # and stack the 4 taps so the kernel issues a single matmul per tile.
    w_t = jnp.transpose(weight, (2, 1, 0)).astype(jnp.float32)       # (4, Cout, Cin)
    w_t = jnp.pad(w_t, ((0, 0), (0, rp - C), (0, 0)))
    w_stacked = w_t.reshape(4 * rp, C).astype(compute_dtype)

    b_2d = bias.reshape(C, 1).astype(jnp.float32)

    # Cross-tile halo contributions (one column per tile edge), precomputed with
    # tiny einsums: O(N*C^2*T) flops vs O(4*N*C^2*L) inside the kernel.
    w0 = weight[:, :, 0].astype(jnp.float32)                         # (Cin, Cout)
    w3 = weight[:, :, 3].astype(jnp.float32)
    xt_last = xf[:, :, tile_l - 1::tile_l]                           # (N, C, T)
    xt_first = xf[:, :, 0::tile_l]                                   # (N, C, T)
    c3_tail = jnp.einsum('io,nit->nto', w3, xt_last)                 # (N, T, Cout)
    c0_head = jnp.einsum('io,nit->nto', w0, xt_first)                # (N, T, Cout)
    zcol = jnp.zeros((N, 1, C), jnp.float32)
    left_halo = jnp.concatenate([zcol, c3_tail[:, :T - 1, :]], axis=1)[..., None]
    right_halo = jnp.concatenate([c0_head[:, 1:, :], zcol], axis=1)[..., None]

    # Split 0/1 interleave permutations: y = e @ P_e + o @ P_o.
    idx = jnp.arange(CH)
    pe = jnp.zeros((CH, 2 * CH), jnp.float32).at[idx, 2 * idx].set(1.0)
    po = jnp.zeros((CH, 2 * CH), jnp.float32).at[idx, 2 * idx + 1].set(1.0)

    x_in = xf.astype(compute_dtype)

    cap = _vmem_capacity_bytes()
    vmem_limit = min(int(cap * 0.8), 100 * 1024 * 1024)

    # TODO(synk): pipeline_mode=pl.Buffered(1) on the grid-invariant operands
    # (w_stacked / bias / P) would halve their resident VMEM; skipped here for
    # compatibility with older Pallas releases.
    out = pl.pallas_call(
        _upsample1d_kernel,
        out_shape=jax.ShapeDtypeStruct((N, C, 2 * L_pad), jnp.float32),
        grid_spec=pltpu.PrefetchScalarGridSpec(
            num_scalar_prefetch=0,
            grid=(N, T),
            in_specs=[
                pl.BlockSpec((1, C, tile_l), lambda n, t: (n, 0, t)),
                pl.BlockSpec((4 * rp, C), lambda n, t: (0, 0)),
                pl.BlockSpec((C, 1), lambda n, t: (0, 0)),
                pl.BlockSpec((1, 1, C, 1), lambda n, t: (n, t, 0, 0)),
                pl.BlockSpec((1, 1, C, 1), lambda n, t: (n, t, 0, 0)),
                pl.BlockSpec((CH, 2 * CH), lambda n, t: (0, 0)),
                pl.BlockSpec((CH, 2 * CH), lambda n, t: (0, 0)),
            ],
            out_specs=pl.BlockSpec((1, C, 2 * tile_l), lambda n, t: (n, 0, t)),
        ),
        compiler_params=pltpu.CompilerParams(
            dimension_semantics=("parallel", "parallel"),
            vmem_limit_bytes=vmem_limit,
        ),
    )(x_in, w_stacked, b_2d, left_halo, right_halo, pe, po)

    if L_pad != L:
        # TODO(synk): crop is one extra XLA pass over the padded output; only
        # taken for L that is neither a multiple of 128 nor <= 256.
        out = out[:, :, :2 * L]
    return out


def _ref_conv_transpose1d(x, w, b, stride=2, padding=1):
    """NumPy reference for nn.ConvTranspose1d(dim, dim, 4, 2, 1)."""
    N, Cin, L = x.shape
    _, Cout, K = w.shape
    Lout = (L - 1) * stride - 2 * padding + K
    y = np.zeros((N, Cout, Lout), dtype=np.float32)
    for n in range(N):
        for ci in range(Cin):
            for li in range(L):
                for k in range(K):
                    lo = li * stride - padding + k
                    if 0 <= lo < Lout:
                        y[n, :, lo] += x[n, ci, li] * w[ci, :, k]
    return y + b[None, :, None]


if __name__ == "__main__":
    # Test 1: small single-tile case (batch=2, dim=4, length=16).
    N, C, L = 2, 4, 16
    kx, kw, kb = jax.random.split(jax.random.PRNGKey(0), 3)
    x = jax.random.normal(kx, (N, C, L), dtype=jnp.float32)
    # PyTorch ConvTranspose1d weight shape: (in_channels, out_channels, kernel_size)
    weight = 0.1 * jax.random.normal(kw, (C, C, 4), dtype=jnp.float32)
    bias = 0.1 * jax.random.normal(kb, (C,), dtype=jnp.float32)

    y = jax.block_until_ready(upsample1d(x, weight, bias))
    y_ref = _ref_conv_transpose1d(np.asarray(x), np.asarray(weight), np.asarray(bias))
    assert y.shape == (N, C, 2 * L), y.shape
    np.testing.assert_allclose(np.asarray(y), y_ref, rtol=1e-5, atol=1e-5)

    # Test 2: tiled-L path (cross-tile halos + chunked interleave): L=512, tile=256.
    N2, C2, L2 = 1, 8, 512
    kx2, kw2, kb2 = jax.random.split(jax.random.PRNGKey(1), 3)
    x2 = jax.random.normal(kx2, (N2, C2, L2), dtype=jnp.float32)
    w2 = 0.1 * jax.random.normal(kw2, (C2, C2, 4), dtype=jnp.float32)
    b2 = 0.1 * jax.random.normal(kb2, (C2,), dtype=jnp.float32)
    y2 = jax.block_until_ready(upsample1d(x2, w2, b2, tile_l=256))
    y2_ref = _ref_conv_transpose1d(np.asarray(x2), np.asarray(w2), np.asarray(b2))
    np.testing.assert_allclose(np.asarray(y2), y2_ref, rtol=1e-5, atol=1e-5)

    # Test 3: irregular length (pad-to-128 + crop path): L=300 -> L_pad=384, 3 tiles.
    N3, C3, L3 = 1, 8, 300
    kx3, kw3, kb3 = jax.random.split(jax.random.PRNGKey(2), 3)
    x3 = jax.random.normal(kx3, (N3, C3, L3), dtype=jnp.float32)
    w3_ = 0.1 * jax.random.normal(kw3, (C3, C3, 4), dtype=jnp.float32)
    b3 = 0.1 * jax.random.normal(kb3, (C3,), dtype=jnp.float32)
    y3 = jax.block_until_ready(upsample1d(x3, w3_, b3))
    assert y3.shape == (N3, C3, 2 * L3), y3.shape
    y3_ref = _ref_conv_transpose1d(np.asarray(x3), np.asarray(w3_), np.asarray(b3))
    np.testing.assert_allclose(np.asarray(y3), y3_ref, rtol=1e-5, atol=1e-5)

    print("KERNEL_OK")
</pallas_src>

<mosaic_0001>
module attributes {stable_mosaic.version = 11 : i64} {
  func.func @_upsample1d_kernel(%arg0: i32, %arg1: i32, %arg2: memref<1x4x16xf32, #tpu.memory_space<vmem>>, %arg3: memref<32x4xf32, #tpu.memory_space<vmem>>, %arg4: memref<4x1xf32, #tpu.memory_space<vmem>>, %arg5: memref<1x1x4x1xf32, #tpu.memory_space<vmem>>, %arg6: memref<1x1x4x1xf32, #tpu.memory_space<vmem>>, %arg7: memref<16x32xf32, #tpu.memory_space<vmem>>, %arg8: memref<16x32xf32, #tpu.memory_space<vmem>>, %arg9: memref<1x4x32xf32, #tpu.memory_space<vmem>>) attributes {dimension_semantics = [#tpu.dimension_semantics<parallel>, #tpu.dimension_semantics<parallel>], iteration_bounds = array<i64: 2, 1>, scalar_prefetch = 0 : i64, scratch_operands = 0 : i64, tpu.core_type = #tpu.core_type<tc>, window_params = [{transform_indices = @transform_0, window_bounds = array<i64: 1, 4, 16>}, {pipeline_mode = #tpu.pipeline_mode<synchronous>, transform_indices = @transform_1, window_bounds = array<i64: 32, 4>}, {pipeline_mode = #tpu.pipeline_mode<synchronous>, transform_indices = @transform_2, window_bounds = array<i64: 4, 1>}, {transform_indices = @transform_3, window_bounds = array<i64: 1, 1, 4, 1>}, {transform_indices = @transform_4, window_bounds = array<i64: 1, 1, 4, 1>}, {pipeline_mode = #tpu.pipeline_mode<synchronous>, transform_indices = @transform_5, window_bounds = array<i64: 16, 32>}, {pipeline_mode = #tpu.pipeline_mode<synchronous>, transform_indices = @transform_6, window_bounds = array<i64: 16, 32>}, {transform_indices = @transform_7, window_bounds = array<i64: 1, 4, 32>}]} {
    %c0 = arith.constant 0 : index
    %c0_0 = arith.constant 0 : index
    %c0_1 = arith.constant 0 : index
    %0 = vector.load %arg2[%c0, %c0_0, %c0_1] : memref<1x4x16xf32, #tpu.memory_space<vmem>>, vector<1x4x16xf32>
    %1 = vector.shape_cast %0 : vector<1x4x16xf32> to vector<4x16xf32>
    %c0_2 = arith.constant 0 : index
    %c0_3 = arith.constant 0 : index
    %2 = vector.load %arg3[%c0_2, %c0_3] : memref<32x4xf32, #tpu.memory_space<vmem>>, vector<32x4xf32>
    %cst = arith.constant dense<0.000000e+00> : vector<32x16xf32>
    %3 = tpu.matmul %2, %1, %cst {dimension_numbers = #tpu.dot_dimension_numbers<[1], [0], [0], [1], [0, 0, 1, 1], [], []>, precision = #tpu.contract_precision<fp32>} : vector<32x4xf32>, vector<4x16xf32>, vector<32x16xf32> -> vector<32x16xf32>
    %4 = vector.extract_strided_slice %3 {offsets = [0, 0], sizes = [4, 16], strides = [1, 1]} : vector<32x16xf32> to vector<4x16xf32>
    %5 = vector.extract_strided_slice %3 {offsets = [8, 0], sizes = [4, 16], strides = [1, 1]} : vector<32x16xf32> to vector<4x16xf32>
    %6 = vector.extract_strided_slice %3 {offsets = [16, 0], sizes = [4, 16], strides = [1, 1]} : vector<32x16xf32> to vector<4x16xf32>
    %7 = vector.extract_strided_slice %3 {offsets = [24, 0], sizes = [4, 16], strides = [1, 1]} : vector<32x16xf32> to vector<4x16xf32>
    %c0_4 = arith.constant 0 : index
    %c0_5 = arith.constant 0 : index
    %8 = vector.load %arg4[%c0_4, %c0_5] : memref<4x1xf32, #tpu.memory_space<vmem>>, vector<4x1xf32>
    %c0_6 = arith.constant 0 : index
    %c0_7 = arith.constant 0 : index
    %c0_8 = arith.constant 0 : index
    %c0_9 = arith.constant 0 : index
    %9 = vector.load %arg5[%c0_6, %c0_7, %c0_8, %c0_9] : memref<1x1x4x1xf32, #tpu.memory_space<vmem>>, vector<1x1x4x1xf32>
    %10 = vector.shape_cast %9 : vector<1x1x4x1xf32> to vector<4x1xf32>
    %c0_10 = arith.constant 0 : index
    %c0_11 = arith.constant 0 : index
    %c0_12 = arith.constant 0 : index
    %c0_13 = arith.constant 0 : index
    %11 = vector.load %arg6[%c0_10, %c0_11, %c0_12, %c0_13] : memref<1x1x4x1xf32, #tpu.memory_space<vmem>>, vector<1x1x4x1xf32>
    %12 = vector.shape_cast %11 : vector<1x1x4x1xf32> to vector<4x1xf32>
    %13 = vector.extract_strided_slice %7 {offsets = [0, 0], sizes = [4, 15], strides = [1, 1]} : vector<4x16xf32> to vector<4x15xf32>
    %14 = tpu.concatenate %10, %13 in 1 : vector<4x1xf32>, vector<4x15xf32> -> vector<4x16xf32>
    %15 = arith.addf %5, %14 : vector<4x16xf32>
    %16 = vector.broadcast %8 : vector<4x1xf32> to vector<4x16xf32>
    %17 = arith.addf %15, %16 : vector<4x16xf32>
    %18 = vector.extract_strided_slice %4 {offsets = [0, 1], sizes = [4, 15], strides = [1, 1]} : vector<4x16xf32> to vector<4x15xf32>
    %19 = tpu.concatenate %18, %12 in 1 : vector<4x15xf32>, vector<4x1xf32> -> vector<4x16xf32>
    %20 = arith.addf %6, %19 : vector<4x16xf32>
    %21 = vector.broadcast %8 : vector<4x1xf32> to vector<4x16xf32>
    %22 = arith.addf %20, %21 : vector<4x16xf32>
    %c0_14 = arith.constant 0 : index
    %c0_15 = arith.constant 0 : index
    %23 = vector.load %arg7[%c0_14, %c0_15] : memref<16x32xf32, #tpu.memory_space<vmem>>, vector<16x32xf32>
    %c0_16 = arith.constant 0 : index
    %c0_17 = arith.constant 0 : index
    %24 = vector.load %arg8[%c0_16, %c0_17] : memref<16x32xf32, #tpu.memory_space<vmem>>, vector<16x32xf32>
    %cst_18 = arith.constant dense<0.000000e+00> : vector<4x32xf32>
    %25 = tpu.matmul %17, %23, %cst_18 {dimension_numbers = #tpu.dot_dimension_numbers<[1], [0], [0], [1], [0, 0, 1, 1], [], []>, precision = #tpu.contract_precision<fp32>} : vector<4x16xf32>, vector<16x32xf32>, vector<4x32xf32> -> vector<4x32xf32>
    %cst_19 = arith.constant dense<0.000000e+00> : vector<4x32xf32>
    %26 = tpu.matmul %22, %24, %cst_19 {dimension_numbers = #tpu.dot_dimension_numbers<[1], [0], [0], [1], [0, 0, 1, 1], [], []>, precision = #tpu.contract_precision<fp32>} : vector<4x16xf32>, vector<16x32xf32>, vector<4x32xf32> -> vector<4x32xf32>
    %27 = arith.addf %25, %26 : vector<4x32xf32>
    %c0_20 = arith.constant 0 : index
    %c0_21 = arith.constant 0 : index
    %c0_22 = arith.constant 0 : index
    %28 = vector.load %arg9[%c0_20, %c0_21, %c0_22] : memref<1x4x32xf32, #tpu.memory_space<vmem>>, vector<1x4x32xf32>
    %29 = vector.shape_cast %28 : vector<1x4x32xf32> to vector<4x32xf32>
    %30 = vector.shape_cast %27 : vector<4x32xf32> to vector<1x4x32xf32>
    tpu.vector_store %arg9[%c0_20, %c0_21, %c0_22], %30 {strides = array<i32>} : memref<1x4x32xf32, #tpu.memory_space<vmem>>, vector<1x4x32xf32>,
    return
  }
  func.func @transform_0(%arg0: i32, %arg1: i32) -> (i32, i32, i32) {
    %c0_i32 = arith.constant 0 : i32
    %c0_i32_0 = arith.constant 0 : i32
    return %arg0, %c0_i32, %arg1 : i32, i32, i32
  }
  func.func @transform_1(%arg0: i32, %arg1: i32) -> (i32, i32) {
    %c0_i32 = arith.constant 0 : i32
    %c0_i32_0 = arith.constant 0 : i32
    %c0_i32_1 = arith.constant 0 : i32
    return %c0_i32, %c0_i32_0 : i32, i32
  }
  func.func @transform_2(%arg0: i32, %arg1: i32) -> (i32, i32) {
    %c0_i32 = arith.constant 0 : i32
    %c0_i32_0 = arith.constant 0 : i32
    %c0_i32_1 = arith.constant 0 : i32
    return %c0_i32, %c0_i32_0 : i32, i32
  }
  func.func @transform_3(%arg0: i32, %arg1: i32) -> (i32, i32, i32, i32) {
    %c0_i32 = arith.constant 0 : i32
    %c0_i32_0 = arith.constant 0 : i32
    %c0_i32_1 = arith.constant 0 : i32
    return %arg0, %arg1, %c0_i32, %c0_i32_0 : i32, i32, i32, i32
  }
  func.func @transform_4(%arg0: i32, %arg1: i32) -> (i32, i32, i32, i32) {
    %c0_i32 = arith.constant 0 : i32
    %c0_i32_0 = arith.constant 0 : i32
    %c0_i32_1 = arith.constant 0 : i32
    return %arg0, %arg1, %c0_i32, %c0_i32_0 : i32, i32, i32, i32
  }
  func.func @transform_5(%arg0: i32, %arg1: i32) -> (i32, i32) {
    %c0_i32 = arith.constant 0 : i32
    %c0_i32_0 = arith.constant 0 : i32
    %c0_i32_1 = arith.constant 0 : i32
    return %c0_i32, %c0_i32_0 : i32, i32
  }
  func.func @transform_6(%arg0: i32, %arg1: i32) -> (i32, i32) {
    %c0_i32 = arith.constant 0 : i32
    %c0_i32_0 = arith.constant 0 : i32
    %c0_i32_1 = arith.constant 0 : i32
    return %c0_i32, %c0_i32_0 : i32, i32
  }
  func.func @transform_7(%arg0: i32, %arg1: i32) -> (i32, i32, i32) {
    %c0_i32 = arith.constant 0 : i32
    %c0_i32_0 = arith.constant 0 : i32
    return %arg0, %c0_i32, %arg1 : i32, i32, i32
  }
}

</mosaic_0001>

<bundles_post_ra>
// kernel: tpu_custom_call.1
= control target key start
LH: loop header
LB: loop body
LE: loop exit
PB: predicated region body
PF: predicated region fallthrough
CT: control target
= control target key end

     0   :  { %12 = vsyncpa [#allocation3], 0  ;;  %s1450_s0 = inlined_call_operand.vmem [shape: f32[2,4,16], index: 0, kind: input, shape index: {}]   ;;  %s1451_s1 = inlined_call_operand.vmem [shape: f32[32,4], index: 1, kind: input, shape index: {}]   ;;  %s1452_s2 = inlined_call_operand.vmem [shape: f32[4,1], index: 2, kind: input, shape index: {}]   ;;  %s1453_s3 = inlined_call_operand.vmem [shape: f32[2,1,4,1], index: 3, kind: input, shape index: {}]   ;;  %s1454_s4 = inlined_call_operand.vmem [shape: f32[2,1,4,1], index: 4, kind: input, shape index: {}]   ;;  %s1455_s5 = inlined_call_operand.vmem [shape: f32[16,32], index: 5, kind: input, shape index: {}]   ;;  %s1456_s6 = inlined_call_operand.vmem [shape: f32[16,32], index: 6, kind: input, shape index: {}]   ;;  %s1457_s7 = inlined_call_operand.hbm [shape: f32[2,4,32], index: 7, kind: output, shape index: {}]  }
   0x1   :  { %14 = vsyncpa [#allocation3 + $0x1], 0  ;;  %s1291_s24 = smov 0   ;;  %s1293_s25 = smov 0  }
   0x2   :  { %s1295_s26 = smov 0   ;;  %s1297_s27 = smov 0  }
   0x3   :  { %s1299_s28 = smov 0   ;;  %s1301_s29 = smov 0  }
   0x4 LB: > { %s1093_s30 = sadd.s32 4294967295, %s1245_s29   ;;  %s1094_s8 = sadd.s32 4294967294, %s1245_s29   ;;  %s1245_s29 = sphi %s1301_s29, %s20_s29   ;;  %s1241_s28 = sphi %s1299_s28, %s1464_s28   ;;  %s1237_s27 = sphi %s1297_s27, %s1463_s27   ;;  %s1233_s26 = sphi %s1295_s26, %s1462_s26   ;;  %s1229_s25 = sphi %s1293_s25, %s1461_s25   ;;  %s1225_s24 = sphi %s1291_s24, %s1460_s24  }
   0x5   : > { %s32_s9 = sadd.s32 1, %s1241_s28  ;;  %s209_s10 = sadd.s32 1, %s1233_s26 }
   0x6   : > { %p34_p0 = scmp.ge.s32.totalorder %s32_s9, 2  ;;  %p219_p1 = scmp.ne.s32.totalorder %s1233_s26, %s1229_s25 }
   0x7   : > { %p220_p2 = scmp.eq.s32.totalorder %s1093_s30, 1  ;;  %p225_p3 = scmp.ne.s32.totalorder %s1229_s25, %s1225_s24 }
   0x8   : > { %s1466_s9 = smov (%p34_p0, %s32_s9), 0  ;;  %p226_p5 = scmp.eq.s32.totalorder %s1094_s8, 1 }
   0x9   : > { %p1331_p4 = por %p220_p2, %p219_p1  ;;  %s204_s12 = ssub.s32 %s1241_s28, %s1466_s9 }
   0xa   : > { %p1097_p6 = scmp.ge.s32.totalorder %s1245_s29, 1  ;;  %p207_p7 = scmp.eq.s32.totalorder %s204_s12, 0 }
   0xb   : > { %p1338_p8 = por %p226_p5, %p225_p3  ;;  %p286_p9 = scmp.lt.s32.totalorder %s1245_s29, 3 }
   0xc   : > { %s1344_s14 = scalar_select %p207_p7, %s1233_s26, %s209_s10  }
   0xd   : > { %p287_p10 = pnand %p1097_p6, %p286_p9 }
   0xe   : > { %p334_p11 = scmp.lt.s32.totalorder (!%p287_p10), %s1237_s27, 1  ;;  %s1249_s30 = smov (!%p287_p10), 15  }
   0xf   : > { %290 = sbr.rel (%p287_p10) target bundleno = 507 (0x1fb), region = 48 }
  0x14   : > { %v356_v0 = vld [vmem:[%s1451_s1] sm:$0xff]  ;;  %vm360_vm0 = vcmask 31744   ;;  %v357_v1 = vld [vmem:[%s1451_s1 + $0x8] sm:$0xff]  ;;  %s335_s19 = scalar_select %p334_p11, %s1237_s27, 1  ;;  %v358_v6 = vld [vmem:[%s1451_s1 + $0x10] sm:$0xff]  ;;  %vm373_vm1 = vcmask 1043456  }
  0x15   : > { %v362_v2 = vsel %vm360_vm0, %v356_v0, 0  ;;  %v365_v3 = vsel %vm360_vm0, %v357_v1, 0  ;;  %v368_v9 = vsel %vm360_vm0, %v358_v6, 0  ;;  %v359_v19 = vld [vmem:[%s1451_s1 + $0x18] sm:$0xff]  ;;  %v616_v46 = vld [vmem:[%s1452_s2] sm:$0xf] }
  0x16   : > { %v394_v4 = vand.u32 4294901760, %v362_v2  ;;  %v402_v5 = vand.u32 4294901760, %v365_v3  ;;  %s1359_s22 = sshll.u32 %s335_s19, 2  ;;  %v410_v16 = vand.u32 4294901760, %v368_v9  ;;  %v371_v23 = vsel %vm360_vm0, %v359_v19, 0  ;;  %v647_v60 = vld [vmem:[%s1456_s6 + $0x8] sm:$0xff] }
  0x17   : > { %s340_s8 = scalar_lea.vmem %s1450_s0, %s1359_s22  ;;  %v418_v28 = vand.u32 4294901760, %v371_v23  ;;  %v1247_v47 = vmov 0   ;;  %v1376_v61 = vand.u32 4294901760, %v647_v60  ;;  %s1248_s19 = smov 127   ;;  %vm640_vm2 = vcmask 121856  }
  0x18   : > { %v395_v7 = vsub.f32 %v362_v2, %v394_v4  ;;  %v403_v8 = vsub.f32 %v365_v3, %v402_v5  ;;  %v355_v10 = vld [vmem:[%s340_s8] sm:$0xf]  ;;  %v411_v22 = vsub.f32 %v368_v9, %v410_v16  ;;  %1165 = vset.pattern.permute.xlu1 %v1247_v47  ;;  %1166 = vset.pattern.permute.xlu0 %v1247_v47  ;;  %s354_s23 = scalar_lea.vmem %s1454_s4, %s1359_s22  ;;  %s1250_s8 = smov 1   ;;  %vm648_vm3 = vcmask 130048  }
  0x19   : > { %v375_v12 = vsel %vm373_vm1, %v355_v10, 0  ;;  %v419_v30 = vsub.f32 %v371_v23, %v418_v28  ;;  %628 = vperm.xlu1 %1165, %v616_v46   ;;  %v1380_v63 = vsub.f32 %v647_v60, %v1376_v61  ;;  %v618_v9 = vld [vmem:[%s354_s23] sm:$0xf]  ;;  %s347_s21 = scalar_lea.vmem %s1453_s3, %s1359_s22  ;;  %vm623_vm4 = vcmask 7168   ;;  %s331_s22 = sand.u32 1, %s1229_s25  }
  0x1a   : > { %v396_v11 = vand.u32 4294901760, %v395_v7  ;;  %v392_v13 = vand.u32 4294901760, %v375_v12  ;;  %v404_v15 = vand.u32 4294901760, %v403_v8  ;;  %v412_v27 = vand.u32 4294901760, %v411_v22  ;;  %s1098_s23 = sshll.u32 %s331_s22, 2 }
  0x1b   : > { %v420_v32 = vand.u32 4294901760, %v419_v30  ;;  %v695_v2 = vand.u32 4294901760, %v1380_v63  ;;  %s333_s15 = scalar_lea.vmem [#allocation2], %s1098_s23  ;;  %vm973_vm5 = vcmask 257024   ;;  %s1187_s23 = scalar_lea.hbm %s1457_s7, 8 }
  0x1c   : > { %v397_v14 = vsub.f32 %v395_v7, %v396_v11  ;;  %393 = vmatpush.msra.mxu0 %v392_v13  ;;  %v443_v18 = vsub.f32 %v375_v12, %v392_v13  ;;  %520 = vmatpush.msra.mxu3 %v392_v13  ;;  %v405_v21 = vsub.f32 %v403_v8, %v404_v15  ;;  %s989_s16 = sshll.u32 %s333_s15, 4  ;;  %s990_s16 = int_to_ptr.vmem [resolvable:$true] %s989_s16 }
  0x1d   : > { %524 = vmatmul.f32.vlgmr.msra.gmra.mxu3 %v396_v11  ;;  %v413_v29 = vsub.f32 %v411_v22, %v412_v27  ;;  %v421_v33 = vsub.f32 %v419_v30, %v420_v32  ;;  %v696_v6 = vsub.f32 %v1380_v63, %v695_v2 }
  0x1e   : > { %v398_v17 = vand.u32 4294901760, %v397_v14  ;;  %482 = vmatpush.msra.mxu2 %v443_v18  ;;  %v444_v20 = vand.u32 4294901760, %v443_v18  ;;  %v406_v26 = vand.u32 4294901760, %v405_v21 }
  0x1f   : > { %485 = vmatmul.f32.vlgmr.msra.gmra.mxu2 %v395_v7  ;;  %v414_v31 = vand.u32 4294901760, %v413_v29  ;;  %v422_v34 = vand.u32 4294901760, %v421_v33  ;;  %v697_v7 = vand.u32 4294901760, %v696_v6 }
  0x20   : > { %399 = vmatmul.f32.vlgmr.msra.gmra.mxu0 %v398_v17  ;;  %v445_v24 = vsub.f32 %v443_v18, %v444_v20  ;;  %667 = vmatpush.msrb.mxu2 %v1376_v61 }
  0x21   : > { %564 = vmatpush.msrb.mxu0 %v444_v20  ;;  %698 = vmatpush.msrb.mxu3 %v697_v7 }
  0x22   : > { %v446_v25 = vand.u32 4294901760, %v445_v24  ;;  %v646_v24 = vld [vmem:[%s1456_s6] sm:$0xff] }
  0x24   : > { %447 = vmatpush.msra.mxu1 %v446_v25  ;;  %v668_v25 = vand.u32 4294901760, %v646_v24 }
  0x25   : > { %449 = vmatmul.f32.vlgmr.msra.gmra.mxu1 %v394_v4  ;;  %530 = vmatmul.f32.gmra.mxu3 %v404_v15 }
  0x26   : > { %598 = vmatpush.msrb.mxu1 %v392_v13  ;;  %669 = vmatpush.msrb.mxu2 %v668_v25 }
  0x27   : > { %490 = vmatmul.f32.gmra.mxu2 %v403_v8 }
  0x28   : > { %407 = vmatmul.f32.gmra.mxu0 %v406_v26  ;;  %v700_v26 = vsub.f32 %v646_v24, %v668_v25  ;;  %726 = vmatpush.msra.mxu2 %v1380_v63 }
  0x2a   : > { %729 = vmatpush.msra.mxu2 %v700_v26 }
  0x2d   : > { %453 = vmatmul.f32.gmra.mxu1 %v402_v5  ;;  %536 = vmatmul.f32.gmra.mxu3 %v412_v27  ;;  %v701_v27 = vand.u32 4294901760, %v700_v26 }
  0x2f   : > { %495 = vmatmul.f32.gmra.mxu2 %v411_v22 }
  0x30   : > { %415 = vmatmul.f32.gmra.mxu0 %v414_v31 }
  0x35   : > { %457 = vmatmul.f32.gmra.mxu1 %v410_v16  ;;  %542 = vmatmul.f32.gmra.mxu3 %v420_v32  ;;  %v644_v32 = vld [vmem:[%s1455_s5] sm:$0xff] }
  0x37   : > { %500 = vmatmul.f32.gmra.mxu2 %v419_v30  ;;  %v645_v30 = vld [vmem:[%s1455_s5 + $0x8] sm:$0xff] }
  0x38   : > { %423 = vmatmul.f32.gmra.mxu0 %v422_v34  ;;  %v828_v31 = vand.u32 4294901760, %v645_v30  ;;  %v830_v34 = vand.u32 4294901760, %v644_v32 }
  0x3a   : > { %v856_v33 = vsub.f32 %v645_v30, %v828_v31  ;;  %913 = vmatpush.msra.mxu1 %v828_v31 }
  0x3c   : > { %888 = vmatpush.msra.mxu0 %v856_v33  ;;  %915 = vmatpush.msra.mxu1 %v830_v34 }
  0x3d   : > { %461 = vmatmul.f32.gmra.mxu1 %v418_v28 }
  0x40   : > { %566 = vmatmul.f32.vlgmr.msrb.gmra.mxu0 %v394_v4 }
  0x45   : > { %600 = vmatmul.f32.vlgmr.msrb.gmra.mxu1 %v394_v4 }
  0x48   : > { %570 = vmatmul.f32.gmra.mxu0 %v402_v5 }
  0x4d   : > { %604 = vmatmul.f32.gmra.mxu1 %v402_v5 }
  0x50   : > { %574 = vmatmul.f32.gmra.mxu0 %v410_v16 }
  0x55   : > { %608 = vmatmul.f32.gmra.mxu1 %v410_v16 }
  0x58   : > { %578 = vmatmul.f32.gmra.mxu0 %v418_v28 }
  0x5d   : > { %612 = vmatmul.f32.gmra.mxu1 %v418_v28  ;;  %v702_v28 = vsub.f32 %v700_v26, %v701_v27 }
  0x5f   : > { %v703_v29 = vand.u32 4294901760, %v702_v28 }
  0x61   : > { %704 = vmatpush.msrb.mxu3 %v703_v29 }
  0x63   : > { %751 = vmatpush.msra.mxu3 %v1376_v61 }
  0x65   : > { %753 = vmatpush.msra.mxu3 %v668_v25 }
  0x9d   : > { %v400_v35 = vpop.f32.mrf.mxu0 }
  0xa0   : > { %v525_v36 = vpop.f32.mrf.mxu3 }
  0xa2   : > { %v450_v37 = vpop.f32.mrf.mxu1  ;;  %v486_v38 = vpop.f32.mrf.mxu2 }
  0xa3   : > { %v451_v55 = vadd.f32 %v450_v37, %v400_v35 }
  0xa5   : > { %v408_v39 = vpop.f32.mrf.mxu0  ;;  %v487_v58 = vadd.f32 %v486_v38, %v451_v55 }
  0xa7   : > { %v526_v62 = vadd.f32 %v525_v36, %v487_v58  ;;  %v862_v36 = vsub.f32 %v644_v32, %v830_v34 }
  0xa8   : > { %v531_v40 = vpop.f32.mrf.mxu3 }
  0xa9   : > { %891 = vmatpush.msra.mxu0 %v862_v36 }
  0xaa   : > { %v454_v41 = vpop.f32.mrf.mxu1  ;;  %v491_v42 = vpop.f32.mrf.mxu2 }
  0xab   : > { %v455_v43 = vadd.f32 %v454_v41, %v408_v39  ;;  %v629_v39 = vpop.permute.xlu1 %628 }
  0xad   : > { %v416_v44 = vpop.f32.mrf.mxu0  ;;  %v492_v45 = vadd.f32 %v491_v42, %v455_v43  ;;  %v857_v43 = vand.u32 4294901760, %v856_v33 }
  0xaf   : > { %v532_v48 = vadd.f32 %v531_v40, %v492_v45  ;;  %v863_v45 = vand.u32 4294901760, %v862_v36  ;;  %v858_v47 = vsub.f32 %v856_v33, %v857_v43 }
  0xb0   : > { %v537_v53 = vpop.f32.mrf.mxu3 }
  0xb2   : > { %v458_v49 = vpop.f32.mrf.mxu1  ;;  %v496_v50 = vpop.f32.mrf.mxu2 }
  0xb3   : > { %v459_v51 = vadd.f32 %v458_v49, %v416_v44  ;;  %v864_v49 = vsub.f32 %v862_v36, %v863_v45 }
  0xb5   : > { %v424_v52 = vpop.f32.mrf.mxu0  ;;  %v497_v54 = vadd.f32 %v496_v50, %v459_v51  ;;  %v617_v51 = vld [vmem:[%s347_s21] sm:$0xf]  ;;  %v865_v55 = vand.u32 4294901760, %v864_v49 }
  0xb7   : > { %v538_v56 = vadd.f32 %v537_v53, %v497_v54 }
  0xb8   : > { %v543_v18 = vpop.f32.mrf.mxu3 }
  0xba   : > { %v462_v57 = vpop.f32.mrf.mxu1  ;;  %v501_v14 = vpop.f32.mrf.mxu2 }
  0xbb   : > { %v463_v13 = vadd.f32 %v462_v57, %v424_v52  ;;  %v859_v52 = vand.u32 4294901760, %v858_v47 }
  0xbd   : > { %v567_v59 = vpop.f32.mrf.mxu0  ;;  %v502_v16 = vadd.f32 %v501_v14, %v463_v13 }
  0xbe   : > { %v568_v0 = vadd.f32 %v567_v59, %v526_v62 }
  0xbf   : > { %v544_v20 = vadd.f32 %v543_v18, %v502_v16 }
  0xc2   : > { %v601_v1 = vpop.f32.mrf.mxu1 }
  0xc3   : > { %v602_v3 = vadd.f32 %v601_v1, %v568_v0 }
  0xc5   : > { %v571_v4 = vpop.f32.mrf.mxu0  ;;  %633 = vrot.lane.b32.xlu0 %v602_v3, %s1248_s19 }
  0xc6   : > { %v572_v5 = vadd.f32 %v571_v4, %v532_v48 }
  0xca   : > { %v605_v8 = vpop.f32.mrf.mxu1 }
  0xcb   : > { %v1390_v10 = vadd.f32 %v605_v8, %v572_v5 }
  0xcd   : > { %v575_v11 = vpop.f32.mrf.mxu0  ;;  %637 = vrot.lane.b32.xlu0 %v618_v9, %s1249_s30  ;;  %s1103_s30 = sshll.u32 %s1237_s27, 2  ;;  %s976_s27 = scalar_lea.sflag [#allocation3], %s331_s22 }
  0xce   : > { %v576_v12 = vadd.f32 %v575_v11, %v538_v56  ;;  %s987_s12 = scalar_lea.hbm %s1457_s7, %s1103_s30 }
  0xcf   : > { %s991_s17 = sshll.u32 %s987_s12, 4  ;;  %s992_s17 = int_to_ptr.hbm [resolvable:$true] %s991_s17 }
  0xd0   : > { %s1181_s18 = sshra.s32 %s992_s17, 4  ;;  %s1182_s18 = int_to_ptr.hbm [resolvable:$true] %s1181_s18 }
  0xd1   : > { %s1183_s19 = scalar_lea.hbm %s1182_s18, 4  ;;  %p1188_p1 = scmp.lt.s32.totalorder %s1182_s18, %s1457_s7 }
  0xd2   : > { %v609_v15 = vpop.f32.mrf.mxu1  ;;  %p1184_p12 = scmp.ne.s32.totalorder %s1182_s18, %s1183_s19  ;;  %p1189_p2 = scmp.lt.s32.totalorder %s1187_s23, %s1183_s19 }
  0xd3   : > { %v610_v17 = vadd.f32 %v609_v15, %v576_v12 }
  0xd4   : > { %p1185_p13 = pnand %p1184_p12, %p1331_p4  ;;  %p1190_p3 = por %p1189_p2, %p1188_p1 }
  0xd5   : > { %v579_v19 = vpop.f32.mrf.mxu0 }
  0xd6   : > { %v580_v21 = vadd.f32 %v579_v19, %v544_v20  ;;  %p1186_p0 = pneg %p1185_p13 }
  0xd8   : > { %p1191_p5 = pnand %p1190_p3, %p1186_p0 }
  0xda   : > { %v613_v22 = vpop.f32.mrf.mxu1 }
  0xdb   : > { %v614_v23 = vadd.f32 %v613_v22, %v580_v21 }
  0xdd   : > { %620 = vrot.lane.b32.xlu1 %v614_v23, %s1250_s8 }
 0x137   : > { %v634_v35 = vpop.permute.xlu0 %633 }
 0x13f   : > { %v638_v37 = vpop.permute.xlu0 %637 }
 0x140   : > { %v641_v38 = vsel %vm640_vm2, %v634_v35, %v638_v37 }
 0x141   : > { %v642_v40 = vadd.f32 %v641_v38, %v610_v17 }
 0x143   : > { %v643_v41 = vadd.f32 %v642_v40, %v629_v39 }
 0x145   : > { %v650_v42 = vsel %vm648_vm3, %v643_v41, 0 }
 0x146   : > { %v670_v44 = vand.u32 4294901760, %v650_v42 }
 0x148   : > { %v671_v46 = vsub.f32 %v650_v42, %v670_v44  ;;  %706 = vmatmul.f32.vlgmr.msrb.gmra.mxu3 %v670_v44 }
 0x149   : > { %803 = vmatpush.msrb.mxu3 %v1376_v61 }
 0x14a   : > { %v672_v48 = vand.u32 4294901760, %v671_v46 }
 0x14b   : > { %805 = vmatpush.msrb.mxu3 %v668_v25 }
 0x14c   : > { %v673_v50 = vsub.f32 %v671_v46, %v672_v48 }
 0x14e   : > { %v674_v53 = vand.u32 4294901760, %v673_v50 }
 0x14f   : > { %v621_v54 = vpop.permute.xlu1 %620 }
 0x150   : > { %v624_v56 = vsel %vm623_vm4, %v617_v51, %v621_v54  ;;  %675 = vmatmul.f32.vlgmr.msrb.gmra.mxu2 %v674_v53  ;;  %757 = vmatmul.f32.vlgmr.msra.gmra.mxu3 %v672_v48 }
 0x151   : > { %v625_v57 = vadd.f32 %v624_v56, %v1390_v10  ;;  %778 = vmatpush.msrb.mxu2 %v695_v2  ;;  %860 = vmatpush.msra.mxu3 %v859_v52 }
 0x153   : > { %v631_v58 = vadd.f32 %v629_v39, %v625_v57  ;;  %782 = vmatpush.msrb.mxu2 %v701_v27  ;;  %866 = vmatpush.msra.mxu3 %v865_v55 }
 0x155   : > { %v812_v59 = vsel %vm648_vm3, %v631_v58, 0 }
 0x156   : > { %v832_v60 = vand.u32 4294901760, %v812_v59 }
 0x158   : > { %732 = vmatmul.f32.vlgmr.msra.gmra.mxu2 %v671_v46  ;;  %807 = vmatmul.f32.vlgmr.msrb.gmra.mxu3 %v670_v44  ;;  %v833_v61 = vsub.f32 %v812_v59, %v832_v60 }
 0x159   : > { %829 = vmatpush.msra.mxu2 %v828_v31  ;;  %965 = vmatpush.msrb.mxu3 %v828_v31 }
 0x15a   : > { %894 = vmatmul.f32.vlgmr.msra.gmra.mxu0 %v833_v61  ;;  %v834_v62 = vand.u32 4294901760, %v833_v61 }
 0x15b   : > { %831 = vmatpush.msra.mxu2 %v830_v34  ;;  %967 = vmatpush.msrb.mxu3 %v830_v34 }
 0x15c   : > { %919 = vmatmul.f32.vlgmr.msra.gmra.mxu1 %v834_v62  ;;  %v835_v63 = vsub.f32 %v833_v61, %v834_v62 }
 0x15e   : > { %v836_v0 = vand.u32 4294901760, %v835_v63 }
 0x160   : > { %784 = vmatmul.f32.vlgmr.msrb.gmra.mxu2 %v670_v44  ;;  %868 = vmatmul.f32.vlgmr.msra.gmra.mxu3 %v832_v60 }
 0x161   : > { %940 = vmatpush.msrb.mxu2 %v857_v43 }
 0x163   : > { %944 = vmatpush.msrb.mxu2 %v863_v45 }
 0x168   : > { %837 = vmatmul.f32.vlgmr.msra.gmra.mxu2 %v836_v0  ;;  %969 = vmatmul.f32.vlgmr.msrb.gmra.mxu3 %v832_v60 }
 0x170   : > { %946 = vmatmul.f32.vlgmr.msrb.gmra.mxu2 %v832_v60 }
 0x1cb   : > { %v707_v1 = vpop.f32.mrf.mxu3 }
 0x1d3   : > { %v676_v2 = vpop.f32.mrf.mxu2  ;;  %v758_v3 = vpop.f32.mrf.mxu3 }
 0x1d4   : > { %v708_v5 = vadd.f32 %v707_v1, %v676_v2 }
 0x1d7   : > { %v895_v16 = vpop.f32.mrf.mxu0 }
 0x1d9   : > { %v920_v18 = vpop.f32.mrf.mxu1 }
 0x1db   : > { %v733_v4 = vpop.f32.mrf.mxu2  ;;  %v808_v7 = vpop.f32.mrf.mxu3 }
 0x1dc   : > { %v734_v6 = vadd.f32 %v733_v4, %v708_v5 }
 0x1de   : > { %v759_v9 = vadd.f32 %v758_v3, %v734_v6 }
 0x1e3   : > { %v785_v8 = vpop.f32.mrf.mxu2  ;;  %v869_v12 = vpop.f32.mrf.mxu3 }
 0x1e4   : > { %v786_v10 = vadd.f32 %v785_v8, %v759_v9 }
 0x1e6   : > { %v809_v11 = vadd.f32 %v808_v7, %v786_v10 }
 0x1eb   : > { %v838_v13 = vpop.f32.mrf.mxu2  ;;  %v970_v22 = vpop.f32.mrf.mxu3 }
 0x1ec   : > { %v839_v14 = vadd.f32 %v838_v13, %v809_v11 }
 0x1ee   : > { %v870_v15 = vadd.f32 %v869_v12, %v839_v14 }
 0x1f0   : > { %v896_v17 = vadd.f32 %v895_v16, %v870_v15 }
 0x1f2   : > { %v921_v19 = vadd.f32 %v920_v18, %v896_v17 }
 0x1f3   : > { %v947_v20 = vpop.f32.mrf.mxu2 }
 0x1f4   : > { %v948_v21 = vadd.f32 %v947_v20, %v921_v19 }
 0x1f6   : > { %v971_v23 = vadd.f32 %v970_v22, %v948_v21 }
 0x1f8   : > { %974 = vst.msk [vmem:[%s333_s15] sm:$0xf] %vm973_vm5, %v971_v23 }
 0x1f9   : > { %1194 = shalt.err (!%p1191_p5)
}
 0x1fa   : > { %1106 = dma.vmem_to_hbm [thread:$0]  (%p1331_p4), %s990_s16, 64, %s992_s17, %s976_s27  }
 0x1fb PF: > { %p1112_p6 = scmp.ge.s32.totalorder %s1245_s29, 2  ;;  %s1003_s22 = sand.u32 1, %s1225_s24  }
 0x1fc   : > { %s1004_s10 = scalar_lea.sflag [#allocation3], %s1003_s22 }
 0x1fd   : > { %p1109_p7 = pnand %p1112_p6, %p1338_p8 }
 0x1ff   : > { %p1110_p9 = pneg %p1109_p7 }
 0x201   : > { %1220 = dma.done.wait (%p1110_p9), %s1004_s10, 64  }
 0x202   : > { %1222 = vsyncadd (%p1110_p9), %s1004_s10, 4294967232  ;;  %s20_s29 = sadd.s32 1, %s1245_s29   ;;  %s1460_s24 = smov %s1229_s25 }
 0x203   : > { %p17_p10 = scmp.ge.s32.totalorder %s20_s29, 4   ;;  %s1461_s25 = smov %s1233_s26 }
 0x204   : > { %s1462_s26 = smov %s1344_s14  ;;  %s1463_s27 = smov %s1241_s28 }
 0x205   : > { %s1464_s28 = smov %s1466_s9  ;;  %19 = sbr.rel (!%p17_p10) target bundleno = 4 (0x4), region = 89 }
 0x20a   :  { %1010 = vsyncpa [#allocation3], 1 }
 0x20b   :  { %1012 = vsyncpa [#allocation3 + $0x1], 1 }

</bundles_post_ra>
